<compile_context>
chip_gen: v7x
topology: tpu7x:2x2x1
jax: 0.10.0
libtpu: 0.0.40
codegen_flags: <defaults>
</compile_context>

<pallas_src>
import jax
import jax.numpy as jnp
from jax.experimental import pallas as pl
from jax.experimental.pallas import tpu as pltpu


def _round_up(x, m):
    return (x + m - 1) // m * m


# ---------------------------------------------------------------------------
# Kernels
# ---------------------------------------------------------------------------
def _sae_kernel_accfree(x_ref, w_enc_ref, b_enc_ref, w_dec_ref, b_dec_ref,
                        dec_ref, enc_ref):
    """One (batch-tile i, hidden-tile j) step; decoded (f32) accumulates
    directly in its grid-invariant output block (resident across j)."""
    j = pl.program_id(1)

    @pl.when(j == 0)
    def _init():
        dec_ref[...] = jnp.zeros_like(dec_ref)

    # Encoder: (tile_b, D) @ (D, tile_h) on the MXU, f32 accumulate,
    # f32 bias + ReLU epilogue on the VPU.
    h = jnp.dot(x_ref[...], w_enc_ref[...], preferred_element_type=jnp.float32)
    h = jnp.maximum(h + b_enc_ref[...], 0.0)            # (tile_b, tile_h)
    h_c = h.astype(enc_ref.dtype)                        # single cast, reused
    enc_ref[...] = h_c

    # Decoder partial sum for this hidden tile: (tile_b, tile_h) @ (tile_h, D).
    dec_ref[...] += jnp.dot(h_c.astype(w_dec_ref.dtype), w_dec_ref[...],
                            preferred_element_type=jnp.float32)

    @pl.when(j == pl.num_programs(1) - 1)
    def _finish():
        dec_ref[...] += b_dec_ref[...]


def _sae_kernel_scratch(x_ref, w_enc_ref, b_enc_ref, w_dec_ref, b_dec_ref,
                        dec_ref, enc_ref, acc_ref):
    """Variant with an f32 scratch accumulator, for non-f32 decoded outputs."""
    j = pl.program_id(1)

    @pl.when(j == 0)
    def _init():
        acc_ref[...] = jnp.zeros_like(acc_ref)

    h = jnp.dot(x_ref[...], w_enc_ref[...], preferred_element_type=jnp.float32)
    h = jnp.maximum(h + b_enc_ref[...], 0.0)
    h_c = h.astype(enc_ref.dtype)
    enc_ref[...] = h_c
    acc_ref[...] += jnp.dot(h_c.astype(w_dec_ref.dtype), w_dec_ref[...],
                            preferred_element_type=jnp.float32)

    @pl.when(j == pl.num_programs(1) - 1)
    def _finish():
        dec_ref[...] = (acc_ref[...] + b_dec_ref[...]).astype(dec_ref.dtype)


# ---------------------------------------------------------------------------
# One-time parameter preparation (hoisted out of the per-call forward)
# ---------------------------------------------------------------------------
def prepare_params(w_enc, b_enc, w_dec, b_dec, *, tile_h=2048,
                   mxu_dtype=jnp.bfloat16):
    """Pad + cast the static weights once.

    w_enc: (D_in, H)   (== PyTorch encoder weight transposed)
    b_enc: (H,) or (1, H)
    w_dec: (H, D_in)   (== PyTorch decoder weight transposed)
    b_dec: (D_in,) or (1, D_in)
    """
    w_enc = jnp.asarray(w_enc)
    w_dec = jnp.asarray(w_dec)
    D_in, H = w_enc.shape
    im = jnp.dtype(mxu_dtype).itemsize
    sub = 16 if im == 2 else 8                 # sublane granularity only — NOT 128
    Dp = _round_up(D_in, sub)

    tile_h = max(128, _round_up(min(tile_h, _round_up(H, 128)), 128))
    Hp = _round_up(H, tile_h)

    return dict(
        w_enc=jnp.pad(w_enc, ((0, Dp - D_in), (0, Hp - H))).astype(mxu_dtype),
        b_enc=jnp.pad(jnp.asarray(b_enc, jnp.float32).reshape(1, -1),
                      ((0, 0), (0, Hp - H))),
        w_dec=jnp.pad(w_dec, ((0, Hp - H), (0, Dp - D_in))).astype(mxu_dtype),
        b_dec=jnp.pad(jnp.asarray(b_dec, jnp.float32).reshape(1, -1),
                      ((0, 0), (0, Dp - D_in))),
        D_in=D_in, H=H, Dp=Dp, Hp=Hp, tile_h=tile_h, mxu_dtype=mxu_dtype,
    )


# ---------------------------------------------------------------------------
# Forward
# ---------------------------------------------------------------------------
def sparse_autoencoder_forward(x, params, *, tile_b=1024,
                               enc_out_dtype=jnp.bfloat16, out_dtype=None):
    """Fused SAE forward.  Returns (decoded, encoded) like the PyTorch module."""
    x = jnp.asarray(x)
    B, D_in = x.shape
    assert D_in == params["D_in"], "x feature dim mismatch with prepared params"
    Dp, Hp, H, tile_h = params["Dp"], params["Hp"], params["H"], params["tile_h"]
    mxu_dtype = params["mxu_dtype"]
    if out_dtype is None:
        out_dtype = x.dtype

    # --- batch tile: multiple of 8, >= 2 grid steps (v7x dual-TC), fits VMEM ---
    Bp8 = _round_up(B, 8)
    tile_b = max(8, _round_up(min(tile_b, Bp8), 8))
    if Bp8 >= 16 and -(-Bp8 // tile_b) < 2:
        tile_b = _round_up((Bp8 + 1) // 2, 8)

    im = jnp.dtype(mxu_dtype).itemsize
    ie = jnp.dtype(enc_out_dtype).itemsize
    io = jnp.dtype(out_dtype).itemsize
    acc_in_out = jnp.dtype(out_dtype) == jnp.dtype(jnp.float32)

    def footprint(tb):
        return (2 * tb * Dp * im            # x tile (double-buffered)
                + 2 * Dp * tile_h * im      # W_enc tile
                + 2 * tile_h * 4            # b_enc tile (f32)
                + 2 * tile_h * Dp * im      # W_dec tile
                + 2 * Dp * 4                # b_dec
                + 2 * tb * tile_h * ie      # encoded tile (dominant)
                + 2 * tb * Dp * io          # decoded tile
                + (0 if acc_in_out else tb * Dp * 4))

    VMEM_CAP = 44 * 2**20                   # safe on v7x (64 MiB/TC); fine on v5e/v6e
    while footprint(tile_b) > VMEM_CAP and tile_b > 8:
        tile_b = max(8, _round_up(tile_b // 2, 8))

    Bp = _round_up(B, tile_b)
    x_p = jnp.pad(x, ((0, Bp - B), (0, Dp - D_in))).astype(mxu_dtype)

    grid = (Bp // tile_b, Hp // tile_h)
    vmem_limit = int(min(max(int(1.5 * footprint(tile_b)), 32 * 2**20), 48 * 2**20))

    # advisory cost estimate (weights re-streamed once per batch tile)
    flops = 4 * Bp * Dp * Hp
    bytes_accessed = (Bp * Dp * im + 2 * grid[0] * Dp * Hp * im + Hp * 4 + Dp * 4
                      + Bp * Hp * ie + Bp * Dp * io)
    cost = pl.CostEstimate(flops=int(flops), transcendentals=0,
                           bytes_accessed=int(bytes_accessed))

    kernel = _sae_kernel_accfree if acc_in_out else _sae_kernel_scratch
    scratch = [] if acc_in_out else [pltpu.VMEM((tile_b, Dp), jnp.float32)]

    decoded_p, encoded_p = pl.pallas_call(
        kernel,
        out_shape=(
            jax.ShapeDtypeStruct((Bp, Dp), out_dtype),       # decoded
            jax.ShapeDtypeStruct((Bp, Hp), enc_out_dtype),   # encoded
        ),
        grid_spec=pltpu.PrefetchScalarGridSpec(
            num_scalar_prefetch=0,
            grid=grid,
            in_specs=[
                pl.BlockSpec((tile_b, Dp), lambda i, j: (i, 0)),      # x
                pl.BlockSpec((Dp, tile_h), lambda i, j: (0, j)),      # W_enc
                pl.BlockSpec((1, tile_h), lambda i, j: (0, j)),       # b_enc
                pl.BlockSpec((tile_h, Dp), lambda i, j: (j, 0)),      # W_dec
                pl.BlockSpec((1, Dp), lambda i, j: (0, 0)),           # b_dec
            ],
            out_specs=[
                pl.BlockSpec((tile_b, Dp), lambda i, j: (i, 0)),      # decoded
                pl.BlockSpec((tile_b, tile_h), lambda i, j: (i, j)),  # encoded
            ],
            scratch_shapes=scratch,
        ),
        compiler_params=pltpu.CompilerParams(
            dimension_semantics=("parallel", "arbitrary"),
            vmem_limit_bytes=vmem_limit,
        ),
        cost_estimate=cost,
    )(x_p, params["w_enc"], params["b_enc"], params["w_dec"], params["b_dec"])

    # Skip the (copy-materializing) slices whenever no padding was added.
    decoded = decoded_p if (Bp == B and Dp == D_in) else decoded_p[:B, :D_in]
    encoded = encoded_p if (Bp == B and Hp == H) else encoded_p[:B, :H]
    return decoded, encoded


def init_params(key, input_size, hidden_size):
    """Deterministic init mimicking PyTorch nn.Linear default U(-1/sqrt(fan_in), +)."""
    k1, k2, k3, k4 = jax.random.split(key, 4)
    bound_enc = 1.0 / jnp.sqrt(jnp.float32(input_size))
    bound_dec = 1.0 / jnp.sqrt(jnp.float32(hidden_size))
    # stored as (in_features, out_features) == PyTorch weight.T
    w_enc = jax.random.uniform(k1, (input_size, hidden_size), jnp.float32,
                               -bound_enc, bound_enc)
    b_enc = jax.random.uniform(k2, (1, hidden_size), jnp.float32,
                               -bound_enc, bound_enc)
    w_dec = jax.random.uniform(k3, (hidden_size, input_size), jnp.float32,
                               -bound_dec, bound_dec)
    b_dec = jax.random.uniform(k4, (1, input_size), jnp.float32,
                               -bound_dec, bound_dec)
    return w_enc, b_enc, w_dec, b_dec


if __name__ == "__main__":
    # Small synthetic shapes consistent with the module:
    #   input_size = reps.shape[1] (DGD latent dim, ~20)  -> use 32
    #   hidden_size = 10**4 in the script                 -> use 512 here
    # TODO(synk): data loading / multiDGD model restore from the script has no
    # Pallas equivalent; only the SparseAutoencoder.forward is implemented.
    batch, input_size, hidden_size = 16, 32, 512

    key = jax.random.PRNGKey(0)
    k_x, k_p = jax.random.split(key)
    x = jax.random.normal(k_x, (batch, input_size), jnp.float32)
    w_enc, b_enc, w_dec, b_dec = init_params(k_p, input_size, hidden_size)

    # plain-JAX f32 reference
    enc_ref = jnp.maximum(x @ w_enc + b_enc, 0.0)
    dec_ref = enc_ref @ w_dec + b_dec

    # 1) f32 everything: validates tiling / padding / accumulation structure
    #    (small tiles so the 2-D grid — batch x hidden — is actually exercised).
    params32 = prepare_params(w_enc, b_enc, w_dec, b_dec,
                              tile_h=256, mxu_dtype=jnp.float32)
    dec32, enc32 = sparse_autoencoder_forward(
        x, params32, tile_b=8, enc_out_dtype=jnp.float32, out_dtype=jnp.float32)
    jax.block_until_ready((dec32, enc32))
    assert enc32.shape == (batch, hidden_size) and dec32.shape == (batch, input_size)
    assert jnp.allclose(enc32, enc_ref, atol=1e-3, rtol=1e-3), "encoded (f32) mismatch"
    assert jnp.allclose(dec32, dec_ref, atol=1e-3, rtol=1e-3), "decoded (f32) mismatch"

    # 2) default fast path: bf16 MXU operands, bf16 encoded stream, f32 decoded.
    params = prepare_params(w_enc, b_enc, w_dec, b_dec, tile_h=256)  # bf16 weights
    decoded, encoded = sparse_autoencoder_forward(x, params, tile_b=8)
    jax.block_until_ready((decoded, encoded))
    assert decoded.shape == (batch, input_size)
    assert encoded.shape == (batch, hidden_size)
    assert encoded.dtype == jnp.bfloat16
    assert jnp.allclose(encoded.astype(jnp.float32), enc_ref,
                        atol=5e-2, rtol=5e-2), "encoded (bf16) mismatch"
    assert jnp.allclose(decoded, dec_ref, atol=5e-2, rtol=5e-2), "decoded (bf16) mismatch"

    print("KERNEL_OK")
</pallas_src>

<mosaic_0001>
module attributes {stable_mosaic.version = 11 : i64} {
  func.func @_sae_kernel_accfree(%arg0: i32, %arg1: i32, %arg2: memref<8x32xf32, #tpu.memory_space<vmem>>, %arg3: memref<32x256xf32, #tpu.memory_space<vmem>>, %arg4: memref<1x256xf32, #tpu.memory_space<vmem>>, %arg5: memref<256x32xf32, #tpu.memory_space<vmem>>, %arg6: memref<1x32xf32, #tpu.memory_space<vmem>>, %arg7: memref<8x32xf32, #tpu.memory_space<vmem>>, %arg8: memref<8x256xf32, #tpu.memory_space<vmem>>) attributes {dimension_semantics = [#tpu.dimension_semantics<parallel>, #tpu.dimension_semantics<arbitrary>], iteration_bounds = array<i64: 2, 2>, scalar_prefetch = 0 : i64, scratch_operands = 0 : i64, tpu.core_type = #tpu.core_type<tc>, window_params = [{transform_indices = @transform_0, window_bounds = array<i64: 8, 32>}, {transform_indices = @transform_1, window_bounds = array<i64: 32, 256>}, {transform_indices = @transform_2, window_bounds = array<i64: 1, 256>}, {transform_indices = @transform_3, window_bounds = array<i64: 256, 32>}, {pipeline_mode = #tpu.pipeline_mode<synchronous>, transform_indices = @transform_4, window_bounds = array<i64: 1, 32>}, {transform_indices = @transform_5, window_bounds = array<i64: 8, 32>}, {transform_indices = @transform_6, window_bounds = array<i64: 8, 256>}]} {
    %c0_i32 = arith.constant 0 : i32
    %0 = arith.cmpi eq, %arg1, %c0_i32 : i32
    %1 = arith.extui %0 : i1 to i32
    %c0_i32_0 = arith.constant 0 : i32
    %2 = arith.cmpi ne, %1, %c0_i32_0 : i32
    scf.if %2 {
      %cst_17 = arith.constant 0.000000e+00 : f32
      %20 = vector.broadcast %cst_17 : f32 to vector<8x32xf32>
      %c0_18 = arith.constant 0 : index
      %c0_19 = arith.constant 0 : index
      %21 = vector.load %arg7[%c0_18, %c0_19] : memref<8x32xf32, #tpu.memory_space<vmem>>, vector<8x32xf32>
      tpu.vector_store %arg7[%c0_18, %c0_19], %20 {strides = array<i32>} : memref<8x32xf32, #tpu.memory_space<vmem>>, vector<8x32xf32>,
    } else {
    }
    %c0 = arith.constant 0 : index
    %c0_1 = arith.constant 0 : index
    %3 = vector.load %arg2[%c0, %c0_1] : memref<8x32xf32, #tpu.memory_space<vmem>>, vector<8x32xf32>
    %c0_2 = arith.constant 0 : index
    %c0_3 = arith.constant 0 : index
    %4 = vector.load %arg3[%c0_2, %c0_3] : memref<32x256xf32, #tpu.memory_space<vmem>>, vector<32x256xf32>
    %cst = arith.constant dense<0.000000e+00> : vector<8x256xf32>
    %5 = tpu.matmul %3, %4, %cst {dimension_numbers = #tpu.dot_dimension_numbers<[1], [0], [0], [1], [0, 0, 1, 1], [], []>} : vector<8x32xf32>, vector<32x256xf32>, vector<8x256xf32> -> vector<8x256xf32>
    %c0_4 = arith.constant 0 : index
    %c0_5 = arith.constant 0 : index
    %6 = vector.load %arg4[%c0_4, %c0_5] : memref<1x256xf32, #tpu.memory_space<vmem>>, vector<1x256xf32>
    %7 = vector.broadcast %6 : vector<1x256xf32> to vector<8x256xf32>
    %8 = arith.addf %5, %7 : vector<8x256xf32>
    %cst_6 = arith.constant 0.000000e+00 : f32
    %9 = vector.broadcast %cst_6 : f32 to vector<8x256xf32>
    %10 = arith.maximumf %8, %9 : vector<8x256xf32>
    %c0_7 = arith.constant 0 : index
    %c0_8 = arith.constant 0 : index
    %11 = vector.load %arg8[%c0_7, %c0_8] : memref<8x256xf32, #tpu.memory_space<vmem>>, vector<8x256xf32>
    tpu.vector_store %arg8[%c0_7, %c0_8], %10 {strides = array<i32>} : memref<8x256xf32, #tpu.memory_space<vmem>>, vector<8x256xf32>,
    %c0_9 = arith.constant 0 : index
    %c0_10 = arith.constant 0 : index
    %12 = vector.load %arg7[%c0_9, %c0_10] : memref<8x32xf32, #tpu.memory_space<vmem>>, vector<8x32xf32>
    %c0_11 = arith.constant 0 : index
    %c0_12 = arith.constant 0 : index
    %13 = vector.load %arg5[%c0_11, %c0_12] : memref<256x32xf32, #tpu.memory_space<vmem>>, vector<256x32xf32>
    %cst_13 = arith.constant dense<0.000000e+00> : vector<8x32xf32>
    %14 = tpu.matmul %10, %13, %cst_13 {dimension_numbers = #tpu.dot_dimension_numbers<[1], [0], [0], [1], [0, 0, 1, 1], [], []>} : vector<8x256xf32>, vector<256x32xf32>, vector<8x32xf32> -> vector<8x32xf32>
    %15 = arith.addf %12, %14 : vector<8x32xf32>
    %c0_14 = arith.constant 0 : index
    %c0_15 = arith.constant 0 : index
    %16 = vector.load %arg7[%c0_14, %c0_15] : memref<8x32xf32, #tpu.memory_space<vmem>>, vector<8x32xf32>
    tpu.vector_store %arg7[%c0_14, %c0_15], %15 {strides = array<i32>} : memref<8x32xf32, #tpu.memory_space<vmem>>, vector<8x32xf32>,
    %c1_i32 = arith.constant 1 : i32
    %17 = arith.cmpi eq, %arg1, %c1_i32 : i32
    %18 = arith.extui %17 : i1 to i32
    %c0_i32_16 = arith.constant 0 : i32
    %19 = arith.cmpi ne, %18, %c0_i32_16 : i32
    scf.if %19 {
      %c0_17 = arith.constant 0 : index
      %c0_18 = arith.constant 0 : index
      %20 = vector.load %arg7[%c0_17, %c0_18] : memref<8x32xf32, #tpu.memory_space<vmem>>, vector<8x32xf32>
      %c0_19 = arith.constant 0 : index
      %c0_20 = arith.constant 0 : index
      %21 = vector.load %arg6[%c0_19, %c0_20] : memref<1x32xf32, #tpu.memory_space<vmem>>, vector<1x32xf32>
      %22 = vector.broadcast %21 : vector<1x32xf32> to vector<8x32xf32>
      %23 = arith.addf %20, %22 : vector<8x32xf32>
      %c0_21 = arith.constant 0 : index
      %c0_22 = arith.constant 0 : index
      %24 = vector.load %arg7[%c0_21, %c0_22] : memref<8x32xf32, #tpu.memory_space<vmem>>, vector<8x32xf32>
      tpu.vector_store %arg7[%c0_21, %c0_22], %23 {strides = array<i32>} : memref<8x32xf32, #tpu.memory_space<vmem>>, vector<8x32xf32>,
    } else {
    }
    return
  }
  func.func @transform_0(%arg0: i32, %arg1: i32) -> (i32, i32) {
    %c0_i32 = arith.constant 0 : i32
    %c0_i32_0 = arith.constant 0 : i32
    return %arg0, %c0_i32 : i32, i32
  }
  func.func @transform_1(%arg0: i32, %arg1: i32) -> (i32, i32) {
    %c0_i32 = arith.constant 0 : i32
    %c0_i32_0 = arith.constant 0 : i32
    return %c0_i32, %arg1 : i32, i32
  }
  func.func @transform_2(%arg0: i32, %arg1: i32) -> (i32, i32) {
    %c0_i32 = arith.constant 0 : i32
    %c0_i32_0 = arith.constant 0 : i32
    return %c0_i32, %arg1 : i32, i32
  }
  func.func @transform_3(%arg0: i32, %arg1: i32) -> (i32, i32) {
    %c0_i32 = arith.constant 0 : i32
    %c0_i32_0 = arith.constant 0 : i32
    return %arg1, %c0_i32 : i32, i32
  }
  func.func @transform_4(%arg0: i32, %arg1: i32) -> (i32, i32) {
    %c0_i32 = arith.constant 0 : i32
    %c0_i32_0 = arith.constant 0 : i32
    %c0_i32_1 = arith.constant 0 : i32
    return %c0_i32, %c0_i32_0 : i32, i32
  }
  func.func @transform_5(%arg0: i32, %arg1: i32) -> (i32, i32) {
    %c0_i32 = arith.constant 0 : i32
    %c0_i32_0 = arith.constant 0 : i32
    return %arg0, %c0_i32 : i32, i32
  }
  func.func @transform_6(%arg0: i32, %arg1: i32) -> (i32, i32) {
    %c0_i32 = arith.constant 0 : i32
    return %arg0, %arg1 : i32, i32
  }
}

</mosaic_0001>

<bundles_post_ra>
// kernel: tpu_custom_call.1
= control target key start
LH: loop header
LB: loop body
LE: loop exit
PB: predicated region body
PF: predicated region fallthrough
CT: control target
= control target key end

     0   :  { %s1532_s0 = inlined_call_operand.vmem [shape: f32[16,32], index: 0, kind: input, shape index: {}]   ;;  %s1533_s1 = inlined_call_operand.vmem [shape: f32[32,512], index: 1, kind: input, shape index: {}]   ;;  %s1534_s2 = inlined_call_operand.vmem [shape: f32[1,512], index: 2, kind: input, shape index: {}]   ;;  %s1535_s3 = inlined_call_operand.vmem [shape: f32[512,32], index: 3, kind: input, shape index: {}]   ;;  %s1536_s4 = inlined_call_operand.vmem [shape: f32[1,32], index: 4, kind: input, shape index: {}]   ;;  %s1537_s5 = inlined_call_operand.hbm [shape: f32[16,32], index: 5, kind: output, shape index: {0}]   ;;  %s1538_s6 = inlined_call_operand.hbm [shape: f32[16,512], index: 6, kind: output, shape index: {1}]  }
   0x1   :  { %1555 = sst [smem:[#allocation24_spill]] %s1533_s1 }
   0x2   :  { %1556 = sst [smem:[#allocation25_spill]] %s1538_s6 }
   0x3   :  { %12 = vsyncpa [#allocation4], 0 }
   0x4   :  { %14 = vsyncpa [#allocation4 + $0x1], 0 }
   0x5   :  { %15 = vsyncpa [#allocation6], 0 }
   0x6   :  { %17 = vsyncpa [#allocation6 + $0x1], 0  ;;  %s1201_s21 = smov 0   ;;  %s1203_s22 = smov 0  }
   0x7   :  { %s1205_s23 = smov 0   ;;  %s1207_s24 = smov 0  }
   0x8   :  { %s1209_s25 = smov 0   ;;  %s1211_s26 = smov 0  }
   0x9   :  { %s1213_s27 = smov 0   ;;  %s1215_s28 = smov 0  }
   0xa   :  { %s1217_s29 = smov 0   ;;  %s1219_s30 = smov 0  }
   0xb   :  { %s1221_s7 = smov 0   ;;  %s1223_s8 = smov 0  }
   0xc   :  { %s1225_s9 = smov 0  }
   0xd LB: > { %1557 = sst [smem:[#allocation9_spill]] %s1112_s21  ;;  %s773_s10 = sadd.s32 4294967295, %s1160_s9   ;;  %s1160_s9 = sphi %s1225_s9, %s23_s9   ;;  %s1156_s8 = sphi %s1223_s8, %s1598_s8   ;;  %s1152_s7 = sphi %s1221_s7, %s1597_s7   ;;  %s1148_s30 = sphi %s1219_s30, %s1596_s30   ;;  %s1144_s29 = sphi %s1217_s29, %s1595_s29   ;;  %s1140_s28 = sphi %s1215_s28, %s1594_s28   ;;  %s1136_s27 = sphi %s1213_s27, %s1593_s27   ;;  %s1132_s26 = sphi %s1211_s26, %s1592_s26   ;;  %s1128_s25 = sphi %s1209_s25, %s1602_s25   ;;  %s1124_s24 = sphi %s1207_s24, %s1601_s24   ;;  %s1120_s23 = sphi %s1205_s23, %s1590_s23   ;;  %s1116_s22 = sphi %s1203_s22, %s1600_s22   ;;  %s1112_s21 = sphi %s1201_s21, %s1599_s21  }
   0xe   : > { %1558 = sst [smem:[#allocation10_spill]] %s1120_s23  ;;  %s774_s11 = sadd.s32 4294967294, %s1160_s9  }
   0xf   : > { %1559 = sst [smem:[#allocation11_spill]] %s1124_s24  ;;  %s32_s12 = sadd.s32 1, %s1152_s7 }
  0x10   : > { %1560 = sst [smem:[#allocation12_spill]] %s1132_s26  ;;  %s35_s13 = sadd.s32 1, %s1156_s8 }
  0x11   : > { %1561 = sst [smem:[#allocation13_spill]] %s1140_s28  ;;  %p33_p0 = scmp.ge.s32.totalorder %s32_s12, 2 }
  0x12   : > { %1562 = sst [smem:[#allocation14_spill]] %s1152_s7  ;;  %s68_s14 = sadd.s32 1, %s1140_s28 }
  0x13   : > { %1563 = sst [smem:[#allocation15_spill]] %s1156_s8  ;;  %p75_p1 = scmp.ne.s32.totalorder %s1140_s28, %s1136_s27 }
  0x14   : > { %1564 = sst [smem:[#allocation16_spill]] %s1160_s9  ;;  %p76_p2 = scmp.eq.s32.totalorder %s1160_s9, 0 }
  0x15   : > { %s1604_s12 = smov (%p33_p0, %s32_s12), 0  ;;  %s1606_s13 = smov (!%p33_p0, %s35_s13), %s1156_s8 }
  0x16   : > { %1565 = sst [smem:[#allocation17_spill]] %s1604_s12  ;;  %s65_s15 = ssub.s32 %s1152_s7, %s1604_s12 }
  0x17   : > { %p1279_p3 = por %p76_p2, %p75_p1  ;;  %p37_p4 = scmp.ge.s32.totalorder %s1606_s13, 2 }
  0x18   : > { %p66_p5 = scmp.eq.s32.totalorder %s65_s15, 0  ;;  %s167_s17 = sadd.s32 1, %s1132_s26 }
  0x19   : > { %p177_p6 = scmp.ne.s32.totalorder %s1132_s26, %s1128_s25  ;;  %s1608_s13 = smov (%p37_p4, %s1606_s13), 0 }
  0x1a   : > { %1567 = sst [smem:[#allocation18_spill]] %s1608_s13  ;;  %s164_s19 = ssub.s32 %s1156_s8, %s1608_s13 }
  0x1b   : > { %s1289_s18 = scalar_select %p66_p5, %s1140_s28, %s68_s14  }
  0x1c   : > { %p1293_p7 = scmp.eq.s32.totalorder %s773_s10, 3  ;;  %p165_p8 = scmp.eq.s32.totalorder %s164_s19, 0 }
  0x1d   : > { %1568 = sst [smem:[#allocation19_spill]] %s1289_s18  ;;  %p183_p9 = scmp.ne.s32.totalorder %s1128_s25, %s1124_s24 }
  0x1e   : > { %p1301_p10 = por %p1293_p7, %p177_p6  ;;  %p184_p11 = scmp.eq.s32.totalorder %s774_s11, 3 }
  0x1f   : > { %s1306_s6 = scalar_select %p165_p8, %s1132_s26, %s167_s17  }
  0x20   : > { %p1308_p12 = por %p184_p11, %p183_p9  ;;  %s192_s10 = sor.u32 %s164_s19, %s65_s15 }
  0x21   : > { %1571 = sst [smem:[#allocation20_spill]] %s1306_s6  ;;  %p193_p13 = scmp.eq.s32.totalorder %s192_s10, 0 }
  0x22   : > { %s1572_s14 = scalar_select %p1308_p12, 1, 0 }
  0x23   : > { %s195_s13 = sadd.s32 1, %s1120_s23  ;;  %p205_p0 = scmp.ne.s32.totalorder %s1120_s23, %s1116_s22 }
  0x24   : > { %1573 = sst [smem:[#allocation21_spill]] %s1572_s14  ;;  %p211_p1 = scmp.ne.s32.totalorder %s1116_s22, %s1112_s21 }
  0x25   : > { %s1318_s8 = scalar_select %p193_p13, %s1120_s23, %s195_s13  }
  0x26   : > { %p1322_p2 = por %p205_p0, %p1293_p7  ;;  %p1326_p4 = por %p211_p1, %p184_p11 }
  0x27   : > { %1574 = sst [smem:[#allocation22_spill]] %s1318_s8  ;;  %p776_p5 = scmp.ge.s32.totalorder %s1160_s9, 4 }
  0x28   : > { %s1576_s11 = scalar_select %p1326_p4, 1, 0 }
  0x29   : > { %231 = sbr.rel (%p776_p5) target bundleno = 62 (0x3e), region = 20 }
  0x2a   : > { %1577 = sst [smem:[#allocation23_spill]] %s1576_s11 }
  0x30   : > { %241 = sbr.rel (!%p1279_p3) target bundleno = 62 (0x3e), region = 28  ;;  %s243_s15 = sand.u32 (%p1279_p3), 1, %s1140_s28  }
  0x31   : > { %s800_s13 = sshll.u32 (%p1279_p3), %s1152_s7, 4  ;;  %s777_s17 = sshll.u32 (%p1279_p3), %s243_s15, 6 }
  0x32   : > { %s1578_s1 = sld [smem:[#allocation24_spill]] (%p1279_p3)  ;;  %s245_s6 = scalar_lea.vmem (%p1279_p3), [#allocation2], %s777_s17 }
  0x38   : > { %s248_s10 = scalar_lea.vmem %s1578_s1, %s800_s13 }
  0x39   : > { %v261_v0 = vld [vmem:[%s248_s10] sm:$0xff]  ;;  %v263_v1 = vld [vmem:[%s248_s10 + $0x8] sm:$0xff] }
  0x3a   : > { %v265_v2 = vld [vmem:[%s248_s10 + $0x20] sm:$0xff]  ;;  %262 = vst [vmem:[%s245_s6] sm:$0xff] %v261_v0  ;;  %264 = vst [vmem:[%s245_s6 + $0x8] sm:$0xff] %v263_v1  ;;  %v267_v3 = vld [vmem:[%s248_s10 + $0x28] sm:$0xff] }
  0x3b   : > { %266 = vst [vmem:[%s245_s6 + $0x10] sm:$0xff] %v265_v2  ;;  %v269_v4 = vld [vmem:[%s248_s10 + $0x40] sm:$0xff]  ;;  %v271_v5 = vld [vmem:[%s248_s10 + $0x48] sm:$0xff]  ;;  %268 = vst [vmem:[%s245_s6 + $0x18] sm:$0xff] %v267_v3 }
  0x3c   : > { %270 = vst [vmem:[%s245_s6 + $0x20] sm:$0xff] %v269_v4  ;;  %272 = vst [vmem:[%s245_s6 + $0x28] sm:$0xff] %v271_v5  ;;  %v273_v6 = vld [vmem:[%s248_s10 + $0x60] sm:$0xff]  ;;  %v275_v7 = vld [vmem:[%s248_s10 + $0x68] sm:$0xff] }
  0x3d   : > { %274 = vst [vmem:[%s245_s6 + $0x30] sm:$0xff] %v273_v6  ;;  %276 = vst [vmem:[%s245_s6 + $0x38] sm:$0xff] %v275_v7 }
  0x3e PF: > { %p780_p3 = scmp.ge.s32.totalorder %s1160_s9, 1  ;;  %p298_p6 = scmp.lt.s32.totalorder %s1160_s9, 5 }
  0x40   : > { %p299_p7 = pnand %p780_p3, %p298_p6 }
  0x41   : > { %s305_s16 = sand.u32 (!%p299_p7), 1, %s1136_s27   ;;  %s1546_s15 = sand.u32 (!%p299_p7), 1, %s1128_s25  }
  0x42   : > { %302 = sbr.rel (%p299_p7) target bundleno = 594 (0x252), region = 59  ;;  %s781_s6 = sshll.u32 (!%p299_p7), %s305_s16, 6 }
  0x43   : > { %s782_s13 = sshll.u32 (!%p299_p7), %s1546_s15, 3  ;;  %s1547_s17 = sand.u32 (!%p299_p7), 1, %s1116_s22  }
  0x44   : > { %p352_p8 = scmp.lt.s32.totalorder (!%p299_p7), %s1148_s30, 1  ;;  %s783_s19 = sshll.u32 (!%p299_p7), %s1547_s17, 4 }
  0x45   : > { %s1349_s20 = sshll.u32 (!%p299_p7), %s1144_s29, 1  ;;  %s786_s28 = sshll.u32 (!%p299_p7), %s1144_s29, 5 }
  0x46   : > { %p358_p9 = scmp.lt.s32.totalorder (!%p299_p7), %s1349_s20, 3  ;;  %p363_p11 = scmp.lt.s32.totalorder (!%p299_p7), %s786_s28, 63 }
  0x47   : > { %s307_s24 = scalar_lea.vmem (!%p299_p7), [#allocation2], %s781_s6  ;;  %s1373_s9 = scalar_lea.vmem (!%p299_p7), [#allocation5], %s783_s19 }
  0x48   : > { %p788_p13 = scmp.ne.s32.totalorder (!%p299_p7), %s1144_s29, 0 }
  0x49   : > { %s353_s10 = scalar_select %p352_p8, %s1148_s30, 1 }
  0x4a   : > { %s1354_s1 = scalar_select %p358_p9, %s1349_s20, 3 }
  0x4b   : > { %s784_s7 = sshll.u32 %s353_s10, 3  ;;  %s1610_s28 = smov (!%p363_p11, %s786_s28), 63  ;;  %vm373_vm0 = vcmask (!%p788_p13), 261120   ;;  %v1162_v8 = vmov (!%p788_p13), 0.0  }
  0x4c   : > { %s1360_s16 = scalar_lea.vmem %s1532_s0, %s784_s7  ;;  %s360_s17 = scalar_lea.vmem %s1534_s2, %s1354_s1 }
  0x4d   : > { %s787_s23 = sshll.u32 %s1610_s28, 3  ;;  %s1371_s10 = scalar_lea.vmem [#allocation3], %s782_s13 }
  0x4e   : > { %s1369_s14 = scalar_lea.vmem %s1535_s3, %s787_s23  ;;  %372 = sbr.rel (%p788_p13) target bundleno = 85 (0x55), region = 67  ;;  %374 = vst.msk [vmem:[%s1371_s10] sm:$0xff] (!%p788_p13), %vm373_vm0, %v1162_v8 }
  0x55 PF: > { %v377_v9 = vld [vmem:[%s307_s24 + $0x8] sm:$0xff]  ;;  %v379_v10 = vld [vmem:[%s307_s24 + $0x18] sm:$0xff]  ;;  %v376_v11 = vld [vmem:[%s307_s24] sm:$0xff]  ;;  %v1163_v16 = vmov 0.0   ;;  %vm396_vm1 = vcmask 261120   ;;  %v386_v7 = vlaneseq  ;;  %p790_p0 = scmp.ne.s32.totalorder %s1144_s29, 1 }
  0x56   : > { %v836_v12 = vpack.c.bf16 %v379_v10, %v377_v9  ;;  %v378_v13 = vld [vmem:[%s307_s24 + $0x10] sm:$0xff]  ;;  %v381_v14 = vld [vmem:[%s307_s24 + $0x28] sm:$0xff]  ;;  %v383_v15 = vld [vmem:[%s307_s24 + $0x38] sm:$0xff]  ;;  %464 = vmatprep.mubr.f32.mxu0 %v1163_v16 }
  0x57   : > { %v838_v17 = vpack.c.bf16 %v378_v13, %v376_v11  ;;  %v840_v18 = vpack.c.bf16 %v383_v15, %v381_v14  ;;  %v380_v19 = vld [vmem:[%s307_s24 + $0x20] sm:$0xff]  ;;  %v382_v20 = vld [vmem:[%s307_s24 + $0x30] sm:$0xff]  ;;  %v493_v22 = vld [vmem:[%s1369_s14 + $0x88] sm:$0xff]  ;;  %v387_v8 = vshrl.u32 %v386_v7, 7 }
  0x58   : > { %837 = vmatprep.subr.bf16.mxu0 %v836_v12  ;;  %v492_v21 = vld [vmem:[%s1369_s14 + $0x80] sm:$0xff]  ;;  %v842_v24 = vpack.c.bf16 %v382_v20, %v380_v19  ;;  %v477_v26 = vld [vmem:[%s1369_s14 + $0x8] sm:$0xff]  ;;  %v494_v27 = vld [vmem:[%s1369_s14 + $0x90] sm:$0xff] }
  0x59   : > { %v476_v23 = vld [vmem:[%s1369_s14] sm:$0xff]  ;;  %839 = vmatpush1.bf16.msra.mxu0 %v838_v17  ;;  %v844_v25 = vpack.c.bf16 %v493_v22, %v492_v21  ;;  %v495_v28 = vld [vmem:[%s1369_s14 + $0x98] sm:$0xff]  ;;  %v478_v31 = vld [vmem:[%s1369_s14 + $0x10] sm:$0xff]  ;;  %v388_v9 = vsub.s32 0, %v387_v8  ;;  %v392_v11 = vsub.s32 1, %v387_v8 }
  0x5a   : > { %841 = vmatprep.subr.bf16.mxu0 %v840_v18  ;;  %v846_v29 = vpack.c.bf16 %v477_v26, %v476_v23  ;;  %v848_v30 = vpack.c.bf16 %v495_v28, %v494_v27  ;;  %v479_v32 = vld [vmem:[%s1369_s14 + $0x18] sm:$0xff]  ;;  %v496_v33 = vld [vmem:[%s1369_s14 + $0xa0] sm:$0xff]  ;;  %v497_v34 = vld [vmem:[%s1369_s14 + $0xa8] sm:$0xff] }
  0x5b   : > { %845 = vmatprep.subr.bf16.mxu1 %v844_v25  ;;  %v850_v35 = vpack.c.bf16 %v479_v32, %v478_v31  ;;  %v375_v36 = vld [vmem:[%s1360_s16] sm:$0xff]  ;;  %v852_v37 = vpack.c.bf16 %v497_v34, %v496_v33  ;;  %v481_v39 = vld [vmem:[%s1369_s14 + $0x28] sm:$0xff]  ;;  %v498_v40 = vld [vmem:[%s1369_s14 + $0xb0] sm:$0xff] }
  0x5c   : > { %847 = vmatpush3.bf16.msra.mxu1 %v846_v29  ;;  %v480_v38 = vld [vmem:[%s1369_s14 + $0x20] sm:$0xff]  ;;  %v499_v41 = vld [vmem:[%s1369_s14 + $0xb8] sm:$0xff]  ;;  %v482_v44 = vld [vmem:[%s1369_s14 + $0x30] sm:$0xff] }
  0x5d   : > { %843 = vmatpush1.bf16.msra.mxu0 %v842_v24  ;;  %849 = vmatprep.subr.bf16.mxu1 %v848_v30  ;;  %v854_v42 = vpack.c.bf16 %v481_v39, %v480_v38  ;;  %v856_v43 = vpack.c.bf16 %v499_v41, %v498_v40  ;;  %v483_v45 = vld [vmem:[%s1369_s14 + $0x38] sm:$0xff]  ;;  %v500_v46 = vld [vmem:[%s1369_s14 + $0xc0] sm:$0xff]  ;;  %v501_v47 = vld [vmem:[%s1369_s14 + $0xc8] sm:$0xff] }
  0x5e   : > { %v858_v48 = vpack.c.bf16 %v483_v45, %v482_v44  ;;  %v860_v49 = vpack.c.bf16 %v501_v47, %v500_v46  ;;  %v484_v50 = vld [vmem:[%s1369_s14 + $0x40] sm:$0xff]  ;;  %v485_v51 = vld [vmem:[%s1369_s14 + $0x48] sm:$0xff]  ;;  %v502_v52 = vld [vmem:[%s1369_s14 + $0xd0] sm:$0xff] }
  0x5f   : > { %v503_v53 = vld [vmem:[%s1369_s14 + $0xd8] sm:$0xff]  ;;  %v862_v54 = vpack.c.bf16 %v485_v51, %v484_v50  ;;  %v486_v56 = vld [vmem:[%s1369_s14 + $0x50] sm:$0xff]  ;;  %v504_v58 = vld [vmem:[%s1369_s14 + $0xe0] sm:$0xff] }
  0x60   : > { %789 = vmatmul.mubr.msk.f32.vlgmr.msra.gmra.mrb[0].mxu0 %vm396_vm1, %v375_v36  ;;  %851 = vmatpush3.bf16.msra.mxu1 %v850_v35  ;;  %v864_v55 = vpack.c.bf16 %v503_v53, %v502_v52  ;;  %v487_v57 = vld [vmem:[%s1369_s14 + $0x58] sm:$0xff]  ;;  %v505_v59 = vld [vmem:[%s1369_s14 + $0xe8] sm:$0xff]  ;;  %v488_v62 = vld [vmem:[%s1369_s14 + $0x60] sm:$0xff] }
  0x61   : > { %853 = vmatprep.subr.bf16.mxu1 %v852_v37  ;;  %v866_v60 = vpack.c.bf16 %v487_v57, %v486_v56  ;;  %v868_v61 = vpack.c.bf16 %v505_v59, %v504_v58  ;;  %v489_v63 = vld [vmem:[%s1369_s14 + $0x68] sm:$0xff]  ;;  %v506_v1 = vld [vmem:[%s1369_s14 + $0xf0] sm:$0xff]  ;;  %v507_v2 = vld [vmem:[%s1369_s14 + $0xf8] sm:$0xff] }
  0x62   : > { %v870_v0 = vpack.c.bf16 %v489_v63, %v488_v62  ;;  %v872_v3 = vpack.c.bf16 %v507_v2, %v506_v1  ;;  %v490_v4 = vld [vmem:[%s1369_s14 + $0x70] sm:$0xff]  ;;  %v491_v5 = vld [vmem:[%s1369_s14 + $0x78] sm:$0xff]  ;;  %v384_v10 = vld [vmem:[%s360_s17] sm:$0x3] }
  0x63   : > { %v874_v6 = vpack.c.bf16 %v491_v5, %v490_v4  ;;  %v389_v12 = vrot.slane %v384_v10, %v388_v9  ;;  %v393_v13 = vrot.slane %v384_v10, %v392_v11  ;;  %v475_v21 = vld [vmem:[%s1371_s10] sm:$0xff] }
  0x64   : > { %855 = vmatpush3.bf16.msra.mxu1 %v854_v42  ;;  %v791_v26 = vld [vmem:[%s1536_s4] ss:$0 sm:$0xff] (!%p790_p0) }
  0x65   : > { %857 = vmatprep.subr.bf16.mxu1 %v856_v43 }
  0x68   : > { %859 = vmatpush3.bf16.msra.mxu1 %v858_v48 }
  0x69   : > { %861 = vmatprep.subr.bf16.mxu1 %v860_v49 }
  0x6c   : > { %863 = vmatpush3.bf16.msra.mxu1 %v862_v54 }
  0x6d   : > { %865 = vmatprep.subr.bf16.mxu1 %v864_v55 }
  0x70   : > { %867 = vmatpush3.bf16.msra.mxu1 %v866_v60 }
  0x71   : > { %869 = vmatprep.subr.bf16.mxu1 %v868_v61 }
  0x74   : > { %871 = vmatpush3.bf16.msra.mxu1 %v870_v0 }
  0x75   : > { %873 = vmatprep.subr.bf16.mxu1 %v872_v3 }
  0x78   : > { %875 = vmatpush3.bf16.msra.mxu1 %v874_v6 }
 0x133   : > { %v466_v14 = vpop.f32.mrb[0].mxu0 }
 0x134   : > { %v467_v15 = vadd.f32 %v466_v14, %v389_v12  ;;  %v468_v16 = vpop.f32.mrb[1].mxu0 }
 0x135   : > { %v469_v17 = vadd.f32 %v468_v16, %v393_v13 }
 0x136   : > { %v471_v18 = vmax.f32 %v467_v15, 0.0 }
 0x137   : > { %v472_v19 = vmax.f32 %v469_v17, 0.0 }
 0x138   : > { %473 = vst [vmem:[%s1373_s9] sm:$0xff] %v471_v18 }
 0x139   : > { %474 = vst [vmem:[%s1373_s9 + $0x8] sm:$0xff] %v472_v19  ;;  %572 = vmatprep.mubr.f32.mxu1 %v472_v19 }
 0x13a   : > { %573 = vmatmul.mubr.f32.vlgmr.msra.gmra.mrb[0].mxu1 %v471_v18 }
 0x20d   : > { %v833_v20 = vpop.f32.mrb[0].mxu1  ;;  %583 = sbr.rel (%p790_p0) target bundleno = 542 (0x21e), region = 71 }
 0x20e   : > { %v834_v22 = vpop.f32.mrb[1].mxu1 }
 0x20f   : > { %v835_v23 = vadd.f32 %v834_v22, %v833_v20 }
 0x211   : > { %v578_v24 = vadd.f32 %v835_v23, %v475_v21 }
 0x213   : > { %579 = vst.msk [vmem:[%s1371_s10] sm:$0xff] %vm396_vm1, %v578_v24 }
 0x21a   : > { %v584_v25 = vld [vmem:[%s1371_s10] sm:$0xff] }
 0x21b   : > { %v592_v27 = vadd.f32 %v791_v26, %v584_v25 }
 0x21d   : > { %593 = vst.msk [vmem:[%s1371_s10] sm:$0xff] %vm396_vm1, %v592_v27 }
 0x21e PF: > { %s794_s26 = sshll.u32 %s1148_s30, 7  ;;  %s613_s8 = sshll.u32 %s1371_s10, 4  ;;  %s614_s8 = int_to_ptr.vmem [resolvable:$true] %s613_s8 }
 0x21f   : > { %s1432_s29 = scalar_lea.hbm %s1537_s5, %s794_s26  ;;  %s1579_s14 = sand.u32 1, %s1128_s25  }
 0x220   : > { %s595_s11 = scalar_lea.sflag [#allocation4], %s1579_s14  ;;  %s994_s15 = scalar_lea.vmem %s614_s8, 128 }
 0x221   : > { %p995_p1 = scmp.ne.s32.totalorder %s614_s8, %s994_s15  ;;  %s1164_s6 = smov [#allocation3]  }
 0x222   : > { %s998_s13 = sshll.u32 %s1164_s6, 4  ;;  %s999_s13 = int_to_ptr.vmem [resolvable:$false] %s998_s13 }
 0x223   : > { %p996_p5 = pnand %p995_p1, %p1301_p10  ;;  %s1000_s17 = scalar_lea.vmem %s999_s13, 256 }
 0x224   : > { %p1001_p6 = scmp.lt.s32.totalorder %s614_s8, %s999_s13  ;;  %p1002_p7 = scmp.lt.s32.totalorder %s1000_s17, %s994_s15 }
 0x225   : > { %p997_p3 = pneg %p996_p5 }
 0x226   : > { %p1003_p8 = por %p1002_p7, %p1001_p6 }
 0x228   : > { %p1004_p9 = pnand %p1003_p8, %p997_p3 }
 0x22a   : > { %1007 = shalt.err (!%p1004_p9)
}
 0x22b   : > { %s1008_s19 = scalar_lea.hbm %s1432_s29, 128  ;;  %s1012_s10 = scalar_lea.hbm %s1537_s5, 256 }
 0x22c   : > { %p1009_p11 = scmp.ne.s32.totalorder %s1432_s29, %s1008_s19  ;;  %p1013_p1 = scmp.lt.u32.totalorder %s1432_s29, %s1537_s5 }
 0x22d   : > { %p1014_p5 = scmp.lt.u32.totalorder %s1012_s10, %s1008_s19  ;;  %p1016_p6 = scmp.lt.u32.totalorder %s1008_s19, %s1432_s29 }
 0x22e   : > { %p1010_p13 = pnand %p1009_p11, %p1301_p10 }
 0x22f   : > { %p1015_p3 = por %p1014_p5, %p1013_p1 }
 0x230   : > { %p1011_p0 = pneg %p1010_p13 }
 0x231   : > { %p1017_p7 = por %p1016_p6, %p1015_p3 }
 0x233   : > { %p1018_p8 = pnand %p1017_p7, %p1011_p0 }
 0x235   : > { %1021 = shalt.err (!%p1018_p8)
}
 0x236   : > { %876 = dma.vmem_to_hbm [thread:$0]  (%p1301_p10), %s614_s8, 128, %s1432_s29, %s595_s11  }
 0x237   : > { %s796_s1 = sshll.u32 %s1148_s30, 2  ;;  %s629_s24 = sshll.u32 %s1373_s9, 4  ;;  %s1457_s24 = int_to_ptr.vmem [resolvable:$true] %s629_s24 }
 0x238   : > { %s625_s26 = sadd.s32 %s796_s1, %s1349_s20  ;;  %s1580_s15 = sld [smem:[#allocation25_spill]] }
 0x239   : > { %s797_s28 = sshll.u32 %s625_s26, 7  ;;  %s1581_s6 = sand.u32 1, %s1116_s22  }
 0x23a   : > { %s600_s13 = scalar_lea.sflag [#allocation6], %s1581_s6  ;;  %s1022_s17 = scalar_lea.vmem %s1457_s24, 256 }
 0x23b   : > { %p1023_p9 = scmp.ne.s32.totalorder %s1457_s24, %s1022_s17  ;;  %s1165_s30 = smov [#allocation5]  }
 0x23c   : > { %s1026_s9 = sshll.u32 %s1165_s30, 4  ;;  %s1027_s9 = int_to_ptr.vmem [resolvable:$false] %s1026_s9 }
 0x23d   : > { %p1024_p11 = pnand %p1023_p9, %p1322_p2  ;;  %s1028_s20 = scalar_lea.vmem %s1027_s9, 512 }
 0x23e   : > { %s627_s12 = scalar_lea.hbm %s1580_s15, %s797_s28  ;;  %p1029_p13 = scmp.lt.s32.totalorder %s1457_s24, %s1027_s9 }
 0x23f   : > { %p1025_p10 = pneg %p1024_p11  ;;  %p1030_p0 = scmp.lt.s32.totalorder %s1028_s20, %s1022_s17 }
 0x241   : > { %p1031_p1 = por %p1030_p0, %p1029_p13 }
 0x243   : > { %p1032_p5 = pnand %p1031_p1, %p1025_p10 }
 0x245   : > { %1035 = shalt.err (!%p1032_p5)
}
 0x246   : > { %s1036_s29 = scalar_lea.hbm %s627_s12, 256  ;;  %s1040_s19 = scalar_lea.hbm %s1580_s15, 1024 }
 0x247   : > { %p1037_p3 = scmp.ne.s32.totalorder %s627_s12, %s1036_s29  ;;  %p1041_p8 = scmp.lt.u32.totalorder %s627_s12, %s1580_s15 }
 0x248   : > { %p1042_p9 = scmp.lt.u32.totalorder %s1040_s19, %s1036_s29  ;;  %p1044_p4 = scmp.lt.u32.totalorder %s1036_s29, %s627_s12 }
 0x249   : > { %p1038_p6 = pnand %p1037_p3, %p1322_p2 }
 0x24a   : > { %p1043_p11 = por %p1042_p9, %p1041_p8 }
 0x24b   : > { %p1039_p7 = pneg %p1038_p6 }
 0x24c   : > { %p1045_p13 = por %p1044_p4, %p1043_p11 }
 0x24e   : > { %p1046_p10 = pnand %p1045_p13, %p1039_p7 }
 0x250   : > { %1049 = shalt.err (!%p1046_p10)
}
 0x251   : > { %877 = dma.vmem_to_hbm [thread:$0]  (%p1322_p2), %s1457_s24, 256, %s627_s12, %s600_s13  }
 0x252 PF: > { %s1582_s10 = sld [smem:[#allocation16_spill]]  ;;  %s1583_s21 = sld [smem:[#allocation11_spill]] }
 0x258   : > { %p887_p0 = scmp.ge.s32.totalorder %s1582_s10, 2  ;;  %s641_s1 = sand.u32 1, %s1583_s21  }
 0x259   : > { %s642_s26 = scalar_lea.sflag [#allocation4], %s641_s1 }
 0x25a   : > { %p881_p1 = pnand %p887_p0, %p1308_p12 }
 0x25c   : > { %1103 = dma.done.wait (!%p881_p1), %s642_s26, 128  }
 0x25d   : > { %1105 = vsyncadd (!%p881_p1), %s642_s26, 4294967168  ;;  %s1585_s28 = sld [smem:[#allocation9_spill]]  ;;  %s1586_s7 = sld [smem:[#allocation23_spill]] }
 0x263   : > { %s650_s14 = sand.u32 1, %s1585_s28   ;;  %p1587_p4 = scmp.ne.s32.totalorder %s1586_s7, 0 }
 0x264   : > { %s651_s6 = scalar_lea.sflag [#allocation6], %s650_s14 }
 0x265   : > { %p884_p5 = pnand %p887_p0, %p1587_p4 }
 0x267   : > { %1107 = dma.done.wait (!%p884_p5), %s651_s6, 256  }
 0x268   : > { %1109 = vsyncadd (!%p884_p5), %s651_s6, 4294967040  ;;  %s23_s9 = sadd.s32 1, %s1582_s10   ;;  %s1589_s24 = sld [smem:[#allocation10_spill]] }
 0x269   : > { %p1488_p2 = scmp.ge.s32.totalorder %s23_s9, 6   ;;  %s1590_s23 = sld [smem:[#allocation22_spill]] }
 0x26a   : > { %s1591_s12 = sld [smem:[#allocation12_spill]]  ;;  %s1592_s26 = sld [smem:[#allocation20_spill]] }
 0x26b   : > { %s1593_s27 = sld [smem:[#allocation13_spill]]  ;;  %s1594_s28 = sld [smem:[#allocation19_spill]] }
 0x26c   : > { %s1595_s29 = sld [smem:[#allocation14_spill]]  ;;  %s1596_s30 = sld [smem:[#allocation15_spill]] }
 0x26d   : > { %s1597_s7 = sld [smem:[#allocation17_spill]]  ;;  %s1598_s8 = sld [smem:[#allocation18_spill]] }
 0x26e   : > { %s1599_s21 = smov %s1116_s22  ;;  %s1600_s22 = smov %s1589_s24 }
 0x26f   : > { %s1601_s24 = smov %s1128_s25  ;;  %22 = sbr.rel (!%p1488_p2) target bundleno = 13 (0xd), region = 137 }
 0x270   : > { %s1602_s25 = smov %s1591_s12 }
 0x276   :  { %656 = vsyncpa [#allocation4], 1 }
 0x277   :  { %658 = vsyncpa [#allocation4 + $0x1], 1 }
 0x278   :  { %659 = vsyncpa [#allocation6], 1 }
 0x279   :  { %661 = vsyncpa [#allocation6 + $0x1], 1 }

</bundles_post_ra>
